<compile_context>
chip_gen: v5e
topology: v5e:2x2
jax: 0.10.0
libtpu: 0.0.40
codegen_flags: <defaults>
</compile_context>

<pallas_src>
import jax
import jax.numpy as jnp
from jax.experimental import pallas as pl
from jax.experimental.pallas import tpu as pltpu

_LANES = 128
_TILE_ROWS = 4096  # (4096, 128) f32 = 2 MiB/tile; in+out double-buffered ~= 8 MiB VMEM.


def _copy_kernel(w_ref, o_ref):
    # forward(t) is an identity over the stored parameter; t never reaches the
    # device, so the kernel body is a single full-width (lane-dense) tile copy.
    o_ref[...] = w_ref[...]


def history_forward(t, w):
    """History(init_y).forward(t): returns the stored parameter w; t is ignored.

    Fast path — no kernel launch. An identity over a parameter is free under
    XLA, so the Pallas kernel is only used when an explicit materialized copy
    is required (see history_forward_materialized).
    """
    del t  # faithful to the reference — the value is never read or transferred.
    return w.astype(jnp.float32)


def history_forward_materialized(t, w):
    """Same semantics as history_forward, but produces an explicit, distinct HBM
    copy of w via a lane-dense Pallas copy kernel."""
    del t
    orig_shape = w.shape
    w = w.astype(jnp.float32)
    n = w.size
    flat = w.reshape(-1)

    # Lane-dense prefix handled by the kernel; ragged tail (< 128 elems, if any)
    # handled outside it — no padded intermediate is ever materialized.
    n_main = (n // _LANES) * _LANES
    if n_main == 0:
        # State too small for even one lane-dense tile; a kernel launch would be
        # pure overhead.
        return flat.reshape(orig_shape)

    rows = n_main // _LANES
    slab = flat[:n_main].reshape(rows, _LANES)

    # Full-array block for small states (block == full dims is always legal);
    # (4096, 128) row tiles (divisible by (8, 128)) for large ones.
    tile_rows = rows if rows <= _TILE_ROWS else _TILE_ROWS

    out = pl.pallas_call(
        _copy_kernel,
        out_shape=jax.ShapeDtypeStruct((rows, _LANES), jnp.float32),
        grid=(pl.cdiv(rows, tile_rows),),
        in_specs=[pl.BlockSpec((tile_rows, _LANES), lambda i: (i, 0))],
        out_specs=pl.BlockSpec((tile_rows, _LANES), lambda i: (i, 0)),
        cost_estimate=pl.CostEstimate(
            flops=0,
            transcendentals=0,
            bytes_accessed=2 * rows * _LANES * 4,  # pure mem-bound copy
        ),
        compiler_params=pltpu.CompilerParams(
            dimension_semantics=("parallel",)  # shard row tiles across TCs (v7x)
        ),
    )(slab)

    out_flat = out.reshape(-1)
    if n_main != n:
        out_flat = jnp.concatenate([out_flat, flat[n_main:]])
    return out_flat.reshape(orig_shape)


if __name__ == "__main__":
    key = jax.random.PRNGKey(0)
    # init_y -> parameter w; small 2-D state: 4 trajectories x 32 dims
    # (= 128 elems, i.e. exactly one lane-dense (1, 128) tile).
    STATE_ROWS, STATE_COLS = 4, 32
    init_y = jax.random.normal(key, (STATE_ROWS, STATE_COLS), dtype=jnp.float32)
    w = init_y.astype(jnp.float32)  # History.__init__: torch.from_numpy(init_y).float()

    t = jnp.float32(0.5)  # forward input, semantically ignored

    # Fast path (default forward): no kernel, pure identity.
    out_fast = jax.block_until_ready(history_forward(t, w))

    # Kernel path: explicit materialized copy via the Pallas kernel (run once).
    out_kernel = jax.block_until_ready(history_forward_materialized(t, w))

    assert out_fast.shape == w.shape and out_fast.dtype == jnp.float32
    assert out_kernel.shape == w.shape and out_kernel.dtype == jnp.float32
    assert bool(jnp.allclose(out_fast, w)), "fast path must equal the stored parameter w"
    assert bool(jnp.allclose(out_kernel, w)), "kernel output must equal the stored parameter w"
    print("KERNEL_OK")
</pallas_src>

<mosaic_0001>
module attributes {stable_mosaic.version = 11 : i64} {
  func.func @_copy_kernel(%arg0: i32, %arg1: memref<1x128xf32, #tpu.memory_space<vmem>>, %arg2: memref<1x128xf32, #tpu.memory_space<vmem>>) attributes {dimension_semantics = [#tpu.dimension_semantics<parallel>], iteration_bounds = array<i64: 1>, scalar_prefetch = 0 : i64, scratch_operands = 0 : i64, tpu.core_type = #tpu.core_type<tc>, window_params = [{transform_indices = @transform_0, window_bounds = array<i64: 1, 128>}, {transform_indices = @transform_1, window_bounds = array<i64: 1, 128>}]} {
    %c0 = arith.constant 0 : index
    %c0_0 = arith.constant 0 : index
    %0 = vector.load %arg1[%c0, %c0_0] : memref<1x128xf32, #tpu.memory_space<vmem>>, vector<1x128xf32>
    %c0_1 = arith.constant 0 : index
    %c0_2 = arith.constant 0 : index
    %1 = vector.load %arg2[%c0_1, %c0_2] : memref<1x128xf32, #tpu.memory_space<vmem>>, vector<1x128xf32>
    tpu.vector_store %arg2[%c0_1, %c0_2], %0 {strides = array<i32>} : memref<1x128xf32, #tpu.memory_space<vmem>>, vector<1x128xf32>,
    return
  }
  func.func @transform_0(%arg0: i32) -> (i32, i32) {
    %c0_i32 = arith.constant 0 : i32
    %c0_i32_0 = arith.constant 0 : i32
    return %arg0, %c0_i32 : i32, i32
  }
  func.func @transform_1(%arg0: i32) -> (i32, i32) {
    %c0_i32 = arith.constant 0 : i32
    %c0_i32_0 = arith.constant 0 : i32
    return %arg0, %c0_i32 : i32, i32
  }
}

</mosaic_0001>

<bundles_post_ra>
// kernel: tpu_custom_call.1
= control target key start
LH: loop header
LB: loop body
LE: loop exit
PB: predicated region body
PF: predicated region fallthrough
CT: control target
= control target key end

     0   :  { %6 = vsyncpa [#allocation3], 0  ;;  %s114_s0 = inlined_call_operand.hbm [shape: f32[1,128], index: 0, kind: input, shape index: {}]   ;;  %s115_s1 = inlined_call_operand.hbm [shape: f32[1,128], index: 1, kind: output, shape index: {}]  }
   0x1   :  { %7 = vsyncpa [#allocation4], 0  ;;  %s13_s8 = sshll.u32 %s114_s0, 4  ;;  %s96_s9 = smov [#allocation2]   ;;  %s14_s8 = int_to_ptr.hbm [resolvable:$true] %s13_s8 }
   0x2   :  { %s15_s10 = sshll.u32 %s96_s9, 4  ;;  %s16_s10 = int_to_ptr.vmem [resolvable:$true] %s15_s10 }
   0x3   :  { %18 = dma.hbm_to_vmem [thread:$0]  %s14_s8, 16, %s16_s10, [#allocation3]  }
   0x4   :  { %92 = dma.done.wait [#allocation3], 16  }
   0x5   :  { %93 = vsyncadd [#allocation3], 4294967280  ;;  %s97_s11 = smov [#allocation5]   ;;  %s32_s15 = sshll.u32 %s115_s1, 4  ;;  %v23_v0 = vld [vmem:[#allocation2] sm:$0x1]  ;;  %s33_s15 = int_to_ptr.hbm [resolvable:$true] %s32_s15 }
   0x6   :  { %s30_s12 = sshll.u32 %s97_s11, 4  ;;  %24 = vst [vmem:[#allocation5] sm:$0x1] %v23_v0  ;;  %s31_s12 = int_to_ptr.vmem [resolvable:$true] %s30_s12 }
   0x7   :  { %35 = dma.vmem_to_hbm [thread:$0]  %s31_s12, 16, %s33_s15, [#allocation4]  }
   0x8   :  { %94 = dma.done.wait [#allocation4], 16  }
   0x9   :  { %95 = vsyncadd [#allocation4], 4294967280 }
   0xa   :  { %40 = vsyncpa [#allocation3], 1 }
   0xb   :  { %41 = vsyncpa [#allocation4], 1 }

</bundles_post_ra>
